<compile_context>
chip_gen: v5e
topology: v5e:2x2
jax: 0.10.0
libtpu: 0.0.40
codegen_flags: <defaults>
</compile_context>

<pallas_src>
import jax
import jax.numpy as jnp
from jax.experimental import pallas as pl
from jax.experimental.pallas import tpu as pltpu


_VMEM_LIMIT_BYTES = 48 * 1024 * 1024   # > 16/32 MiB scoped defaults, < v7x 64 MiB/TC
_VMEM_ROW_BUDGET = 32 * 1024 * 1024    # tile-size budget (headroom for temporaries)


def _make_kernel(num_hidden: int, tb: int, s: int, c: int):
    """Kernel specialised for `num_hidden` hidden layers and a (tb, s, .) tile."""

    def kernel(x_ref, aw1_ref, ab1_ref, aw2t_ref, *rest):
        # rest = [W_h0, b_h0, ..., W_h{n-1}, b_h{n-1}, W_out, b_out, out_ref]
        out_ref = rest[-1]
        wout_ref, bout_ref = rest[-3], rest[-2]
        hidden_refs = rest[: 2 * num_hidden]

        x3 = x_ref[...]                                # (TB, S, D) f32
        d = x3.shape[-1]
        m_rows = tb * s
        # bf16 operands for the MXU (f32 matmul is emulated / multi-pass); cast
        # in-kernel so x remains a single f32 HBM read (no extra wrapper pass).
        # Reshape is layout-free when S % 8 == 0 (sublane tile).
        x2 = x3.reshape(m_rows, d).astype(jnp.bfloat16)

        # --- Attention: Linear -> Tanh (f32, v5e-safe), score = <h, w2> -----
        h = jnp.tanh(
            jnp.dot(x2, aw1_ref[...], preferred_element_type=jnp.float32)
            + ab1_ref[...]
        )                                              # (M, H_attn) f32
        # N=1 matmul replaced by VPU multiply + lane (XLU) reduce.
        scores = jnp.sum(h * aw2t_ref[...], axis=-1, keepdims=True)   # (M, 1)

        # --- softmax over the seq axis (dim=1 of the original (B, S, D)) ----
        # TODO(synk): a lane-dense (S, TB) transpose of the scores would cut
        # EUP/XLU vreg work ~S-fold; kept in the broadcast-friendly (TB, S, 1)
        # layout (needed anyway for the x * w multiply along D lanes).
        s3 = scores.reshape(tb, s, 1)
        mx = jnp.max(s3, axis=1, keepdims=True)
        e = jnp.exp(s3 - mx)
        w = e * pl.reciprocal(jnp.sum(e, axis=1, keepdims=True), approx=True)

        y2 = (x3 * w).reshape(m_rows, d).astype(jnp.bfloat16)         # (M, D)

        # --- Hidden MLP: [Linear -> ReLU -> Dropout(identity at eval)] * n ---
        for i in range(num_hidden):
            W = hidden_refs[2 * i][...]                # bf16
            b = hidden_refs[2 * i + 1][...]            # f32
            z = jnp.dot(y2, W, preferred_element_type=jnp.float32) + b
            y2 = jnp.maximum(z, 0.0).astype(jnp.bfloat16)

        # --- Output layer: store only the real C columns (compact block) ----
        out2 = (jnp.dot(y2, wout_ref[...], preferred_element_type=jnp.float32)
                + bout_ref[...])                       # (M, C) f32
        out_ref[...] = out2.reshape(tb, s, c).astype(out_ref.dtype)

    return kernel


def m6a_predictor_pallas(x, params, *, rows_per_block: int = 16384):
    """x: (B, S, D) float32.  params: dict of (in, out)-layout f32 weights."""
    B, S, D = x.shape
    x = x.astype(jnp.float32)

    # bf16 for MXU operands (weights are tiny & resident); biases stay f32.
    aw1 = params["attn_w1"].astype(jnp.bfloat16)
    ab1 = params["attn_b1"].astype(jnp.float32)
    aw2_t = params["attn_w2"].reshape(1, -1).astype(jnp.float32)  # VPU use -> f32
    hidden = [(W.astype(jnp.bfloat16), b.astype(jnp.float32))
              for (W, b) in params["hidden"]]
    wout = params["out_w"].astype(jnp.bfloat16)
    bout = params["out_b"].astype(jnp.float32)
    num_hidden = len(hidden)
    C = wout.shape[1]
    H_attn = aw1.shape[1]
    hidden_dims = [W.shape[1] for (W, _) in hidden]

    # --- Batch tile selection -------------------------------------------
    # Per-(batch,seq)-row VMEM estimate: f32 x tile (double-buffered) + bf16
    # copy + weighted f32/bf16 activations + hidden activations + out tile.
    bytes_per_row = (2 * 4 * D) + (2 * D) + (4 * D + 2 * D) + 4 * H_attn
    bytes_per_row += sum(6 * h for h in hidden_dims)
    bytes_per_row += 2 * 4 * C + 6 * C
    cap = max(1, min(B, rows_per_block // max(1, S)))
    cap = min(cap, max(1, _VMEM_ROW_BUDGET // (S * bytes_per_row)))
    if B >= 2:
        cap = min(cap, (B + 1) // 2)   # >= 2 grid blocks -> both v7x TensorCores
    # Largest divisor of B within the cap: no jnp.pad pass over x, no tail mask.
    TB = max(div for div in range(1, cap + 1) if B % div == 0)
    num_blocks = B // TB

    def full_spec(arr):
        nd = arr.ndim
        return pl.BlockSpec(arr.shape, lambda b, _nd=nd: (0,) * _nd)

    in_specs = [
        pl.BlockSpec((TB, S, D), lambda b: (b, 0, 0)),
        full_spec(aw1), full_spec(ab1), full_spec(aw2_t),
    ]
    args = [x, aw1, ab1, aw2_t]
    for (W, bias) in hidden:
        in_specs += [full_spec(W), full_spec(bias)]
        args += [W, bias]
    in_specs += [full_spec(wout), full_spec(bout)]
    args += [wout, bout]

    # Advisory cost estimate for the XLA scheduler.
    M_total = B * S
    flops = 2 * M_total * D * H_attn + 2 * M_total * H_attn
    prev = D
    for hdim in hidden_dims:
        flops += 2 * M_total * prev * hdim
        prev = hdim
    flops += 2 * M_total * prev * C
    transcendentals = M_total * H_attn + 2 * M_total       # tanh + exp + rcp
    weight_bytes = sum(int(a.size) * a.dtype.itemsize for a in args[1:])
    bytes_accessed = (int(x.size) * x.dtype.itemsize       # x read (f32)
                      + M_total * C * 4                    # compact out write
                      + weight_bytes)

    out = pl.pallas_call(
        _make_kernel(num_hidden, TB, S, C),
        out_shape=jax.ShapeDtypeStruct((B, S, C), jnp.float32),
        grid_spec=pltpu.PrefetchScalarGridSpec(
            num_scalar_prefetch=0,
            grid=(num_blocks,),
            in_specs=in_specs,
            # (TB, S, C) compact output block: last dims equal full array dims.
            out_specs=pl.BlockSpec((TB, S, C), lambda b: (b, 0, 0)),
        ),
        compiler_params=pltpu.CompilerParams(
            dimension_semantics=("parallel",),
            vmem_limit_bytes=_VMEM_LIMIT_BYTES,
        ),
        cost_estimate=pl.CostEstimate(
            flops=int(flops),
            transcendentals=int(transcendentals),
            bytes_accessed=int(bytes_accessed),
        ),
    )(*args)
    return out


def init_params(key, input_dim, hidden_layers, num_classes, attn_hidden):
    """Deterministic synthetic params; weights stored (in, out) = torch W.T."""
    ks = jax.random.split(key, 4 + 2 * len(hidden_layers))
    i = 0

    def nxt():
        nonlocal i
        k = ks[i]
        i += 1
        return k

    scale = 0.1
    p = {}
    p["attn_w1"] = scale * jax.random.normal(nxt(), (input_dim, attn_hidden), jnp.float32)
    p["attn_b1"] = scale * jax.random.normal(nxt(), (1, attn_hidden), jnp.float32)
    p["attn_w2"] = scale * jax.random.normal(nxt(), (attn_hidden, 1), jnp.float32)
    hidden = []
    prev = input_dim
    for h in hidden_layers:
        W = scale * jax.random.normal(nxt(), (prev, h), jnp.float32)
        b = scale * jax.random.normal(nxt(), (1, h), jnp.float32)
        hidden.append((W, b))
        prev = h
    p["hidden"] = hidden
    p["out_w"] = scale * jax.random.normal(nxt(), (prev, num_classes), jnp.float32)
    p["out_b"] = scale * jax.random.normal(nxt(), (1, num_classes), jnp.float32)
    return p


def m6a_predictor_ref(x, params):
    """Plain-JAX f32 reference mirroring the PyTorch forward (eval mode)."""
    h = jnp.tanh(x @ params["attn_w1"] + params["attn_b1"])
    scores = h @ params["attn_w2"]                        # (B, S, 1)
    w = jax.nn.softmax(scores, axis=1)                    # softmax over dim=1
    y = x * w
    for (W, b) in params["hidden"]:
        y = jax.nn.relu(y @ W + b)                        # Dropout = identity (eval)
    return y @ params["out_w"] + params["out_b"]


if __name__ == "__main__":
    B, S, D = 2, 8, 56          # input_dim=56 (module default)
    hidden_layers = [64, 32]
    num_classes = 2
    attn_hidden = 32

    key = jax.random.PRNGKey(0)
    kx, kp = jax.random.split(key)
    x = jax.random.normal(kx, (B, S, D), jnp.float32)
    params = init_params(kp, D, hidden_layers, num_classes, attn_hidden)

    out = m6a_predictor_pallas(x, params)
    out = jax.block_until_ready(out)

    ref = m6a_predictor_ref(x, params)
    assert out.shape == (B, S, num_classes)
    # bf16 MXU operands + approx reciprocal -> compare with a loosened tolerance.
    assert jnp.allclose(out, ref, atol=3e-2, rtol=3e-2), "mismatch vs reference"

    print("KERNEL_OK")
</pallas_src>

<mosaic_0001>
module attributes {stable_mosaic.version = 11 : i64} {
  func.func @kernel(%arg0: i32, %arg1: memref<1x8x56xf32, #tpu.memory_space<vmem>>, %arg2: memref<56x32xbf16, #tpu.memory_space<vmem>>, %arg3: memref<1x32xf32, #tpu.memory_space<vmem>>, %arg4: memref<1x32xf32, #tpu.memory_space<vmem>>, %arg5: memref<56x64xbf16, #tpu.memory_space<vmem>>, %arg6: memref<1x64xf32, #tpu.memory_space<vmem>>, %arg7: memref<64x32xbf16, #tpu.memory_space<vmem>>, %arg8: memref<1x32xf32, #tpu.memory_space<vmem>>, %arg9: memref<32x2xbf16, #tpu.memory_space<vmem>>, %arg10: memref<1x2xf32, #tpu.memory_space<vmem>>, %arg11: memref<1x8x2xf32, #tpu.memory_space<vmem>>) attributes {dimension_semantics = [#tpu.dimension_semantics<parallel>], iteration_bounds = array<i64: 2>, scalar_prefetch = 0 : i64, scratch_operands = 0 : i64, tpu.core_type = #tpu.core_type<tc>, window_params = [{transform_indices = @transform_0, window_bounds = array<i64: 1, 8, 56>}, {pipeline_mode = #tpu.pipeline_mode<synchronous>, transform_indices = @transform_1, window_bounds = array<i64: 56, 32>}, {pipeline_mode = #tpu.pipeline_mode<synchronous>, transform_indices = @transform_2, window_bounds = array<i64: 1, 32>}, {pipeline_mode = #tpu.pipeline_mode<synchronous>, transform_indices = @transform_3, window_bounds = array<i64: 1, 32>}, {pipeline_mode = #tpu.pipeline_mode<synchronous>, transform_indices = @transform_4, window_bounds = array<i64: 56, 64>}, {pipeline_mode = #tpu.pipeline_mode<synchronous>, transform_indices = @transform_5, window_bounds = array<i64: 1, 64>}, {pipeline_mode = #tpu.pipeline_mode<synchronous>, transform_indices = @transform_6, window_bounds = array<i64: 64, 32>}, {pipeline_mode = #tpu.pipeline_mode<synchronous>, transform_indices = @transform_7, window_bounds = array<i64: 1, 32>}, {pipeline_mode = #tpu.pipeline_mode<synchronous>, transform_indices = @transform_8, window_bounds = array<i64: 32, 2>}, {pipeline_mode = #tpu.pipeline_mode<synchronous>, transform_indices = @transform_9, window_bounds = array<i64: 1, 2>}, {transform_indices = @transform_10, window_bounds = array<i64: 1, 8, 2>}]} {
    %c0 = arith.constant 0 : index
    %c0_0 = arith.constant 0 : index
    %c0_1 = arith.constant 0 : index
    %0 = vector.load %arg1[%c0, %c0_0, %c0_1] : memref<1x8x56xf32, #tpu.memory_space<vmem>>, vector<1x8x56xf32>
    %1 = vector.shape_cast %0 : vector<1x8x56xf32> to vector<8x56xf32>
    %2 = arith.truncf %1 : vector<8x56xf32> to vector<8x56xbf16>
    %c0_2 = arith.constant 0 : index
    %c0_3 = arith.constant 0 : index
    %3 = vector.load %arg2[%c0_2, %c0_3] : memref<56x32xbf16, #tpu.memory_space<vmem>>, vector<56x32xbf16>
    %cst = arith.constant dense<0.000000e+00> : vector<8x32xf32>
    %4 = tpu.matmul %2, %3, %cst {dimension_numbers = #tpu.dot_dimension_numbers<[1], [0], [0], [1], [0, 0, 1, 1], [], []>} : vector<8x56xbf16>, vector<56x32xbf16>, vector<8x32xf32> -> vector<8x32xf32>
    %c0_4 = arith.constant 0 : index
    %c0_5 = arith.constant 0 : index
    %5 = vector.load %arg3[%c0_4, %c0_5] : memref<1x32xf32, #tpu.memory_space<vmem>>, vector<1x32xf32>
    %6 = vector.broadcast %5 : vector<1x32xf32> to vector<8x32xf32>
    %7 = arith.addf %4, %6 : vector<8x32xf32>
    %8 = math.tanh %7 : vector<8x32xf32>
    %c0_6 = arith.constant 0 : index
    %c0_7 = arith.constant 0 : index
    %9 = vector.load %arg4[%c0_6, %c0_7] : memref<1x32xf32, #tpu.memory_space<vmem>>, vector<1x32xf32>
    %10 = vector.broadcast %9 : vector<1x32xf32> to vector<8x32xf32>
    %11 = arith.mulf %8, %10 : vector<8x32xf32>
    %cst_8 = arith.constant dense<0.000000e+00> : vector<8xf32>
    %12 = vector.multi_reduction <add>, %11, %cst_8 [1] : vector<8x32xf32> to vector<8xf32>
    %13 = vector.shape_cast %12 : vector<8xf32> to vector<8x1xf32>
    %14 = vector.shape_cast %13 : vector<8x1xf32> to vector<1x8x1xf32>
    %cst_9 = arith.constant dense<0xFF800000> : vector<1x1xf32>
    %15 = vector.multi_reduction <maximumf>, %14, %cst_9 [1] : vector<1x8x1xf32> to vector<1x1xf32>
    %16 = vector.shape_cast %15 : vector<1x1xf32> to vector<1x1x1xf32>
    %17 = vector.broadcast %16 : vector<1x1x1xf32> to vector<1x8x1xf32>
    %18 = arith.subf %14, %17 : vector<1x8x1xf32>
    %19 = math.exp %18 : vector<1x8x1xf32>
    %cst_10 = arith.constant dense<0.000000e+00> : vector<1x1xf32>
    %20 = vector.multi_reduction <add>, %19, %cst_10 [1] : vector<1x8x1xf32> to vector<1x1xf32>
    %21 = vector.shape_cast %20 : vector<1x1xf32> to vector<1x1x1xf32>
    %22 = tpu.reciprocal %21 {approx = true} : vector<1x1x1xf32> -> vector<1x1x1xf32>
    %23 = vector.broadcast %22 : vector<1x1x1xf32> to vector<1x8x1xf32>
    %24 = arith.mulf %19, %23 : vector<1x8x1xf32>
    %25 = vector.broadcast %24 : vector<1x8x1xf32> to vector<1x8x56xf32>
    %26 = arith.mulf %0, %25 : vector<1x8x56xf32>
    %27 = vector.shape_cast %26 : vector<1x8x56xf32> to vector<8x56xf32>
    %28 = arith.truncf %27 : vector<8x56xf32> to vector<8x56xbf16>
    %c0_11 = arith.constant 0 : index
    %c0_12 = arith.constant 0 : index
    %29 = vector.load %arg5[%c0_11, %c0_12] : memref<56x64xbf16, #tpu.memory_space<vmem>>, vector<56x64xbf16>
    %c0_13 = arith.constant 0 : index
    %c0_14 = arith.constant 0 : index
    %30 = vector.load %arg6[%c0_13, %c0_14] : memref<1x64xf32, #tpu.memory_space<vmem>>, vector<1x64xf32>
    %cst_15 = arith.constant dense<0.000000e+00> : vector<8x64xf32>
    %31 = tpu.matmul %28, %29, %cst_15 {dimension_numbers = #tpu.dot_dimension_numbers<[1], [0], [0], [1], [0, 0, 1, 1], [], []>} : vector<8x56xbf16>, vector<56x64xbf16>, vector<8x64xf32> -> vector<8x64xf32>
    %32 = vector.broadcast %30 : vector<1x64xf32> to vector<8x64xf32>
    %33 = arith.addf %31, %32 : vector<8x64xf32>
    %cst_16 = arith.constant 0.000000e+00 : f32
    %34 = vector.broadcast %cst_16 : f32 to vector<8x64xf32>
    %35 = arith.maximumf %33, %34 : vector<8x64xf32>
    %36 = arith.truncf %35 : vector<8x64xf32> to vector<8x64xbf16>
    %c0_17 = arith.constant 0 : index
    %c0_18 = arith.constant 0 : index
    %37 = vector.load %arg7[%c0_17, %c0_18] : memref<64x32xbf16, #tpu.memory_space<vmem>>, vector<64x32xbf16>
    %c0_19 = arith.constant 0 : index
    %c0_20 = arith.constant 0 : index
    %38 = vector.load %arg8[%c0_19, %c0_20] : memref<1x32xf32, #tpu.memory_space<vmem>>, vector<1x32xf32>
    %cst_21 = arith.constant dense<0.000000e+00> : vector<8x32xf32>
    %39 = tpu.matmul %36, %37, %cst_21 {dimension_numbers = #tpu.dot_dimension_numbers<[1], [0], [0], [1], [0, 0, 1, 1], [], []>} : vector<8x64xbf16>, vector<64x32xbf16>, vector<8x32xf32> -> vector<8x32xf32>
    %40 = vector.broadcast %38 : vector<1x32xf32> to vector<8x32xf32>
    %41 = arith.addf %39, %40 : vector<8x32xf32>
    %cst_22 = arith.constant 0.000000e+00 : f32
    %42 = vector.broadcast %cst_22 : f32 to vector<8x32xf32>
    %43 = arith.maximumf %41, %42 : vector<8x32xf32>
    %44 = arith.truncf %43 : vector<8x32xf32> to vector<8x32xbf16>
    %c0_23 = arith.constant 0 : index
    %c0_24 = arith.constant 0 : index
    %45 = vector.load %arg9[%c0_23, %c0_24] : memref<32x2xbf16, #tpu.memory_space<vmem>>, vector<32x2xbf16>
    %cst_25 = arith.constant dense<0.000000e+00> : vector<8x2xf32>
    %46 = tpu.matmul %44, %45, %cst_25 {dimension_numbers = #tpu.dot_dimension_numbers<[1], [0], [0], [1], [0, 0, 1, 1], [], []>} : vector<8x32xbf16>, vector<32x2xbf16>, vector<8x2xf32> -> vector<8x2xf32>
    %c0_26 = arith.constant 0 : index
    %c0_27 = arith.constant 0 : index
    %47 = vector.load %arg10[%c0_26, %c0_27] : memref<1x2xf32, #tpu.memory_space<vmem>>, vector<1x2xf32>
    %48 = vector.broadcast %47 : vector<1x2xf32> to vector<8x2xf32>
    %49 = arith.addf %46, %48 : vector<8x2xf32>
    %50 = vector.shape_cast %49 : vector<8x2xf32> to vector<1x8x2xf32>
    %c0_28 = arith.constant 0 : index
    %c0_29 = arith.constant 0 : index
    %c0_30 = arith.constant 0 : index
    %51 = vector.load %arg11[%c0_28, %c0_29, %c0_30] : memref<1x8x2xf32, #tpu.memory_space<vmem>>, vector<1x8x2xf32>
    tpu.vector_store %arg11[%c0_28, %c0_29, %c0_30], %50 {strides = array<i32>} : memref<1x8x2xf32, #tpu.memory_space<vmem>>, vector<1x8x2xf32>,
    return
  }
  func.func @transform_0(%arg0: i32) -> (i32, i32, i32) {
    %c0_i32 = arith.constant 0 : i32
    %c0_i32_0 = arith.constant 0 : i32
    %c0_i32_1 = arith.constant 0 : i32
    return %arg0, %c0_i32, %c0_i32_0 : i32, i32, i32
  }
  func.func @transform_1(%arg0: i32) -> (i32, i32) {
    %c0_i32 = arith.constant 0 : i32
    %c0_i32_0 = arith.constant 0 : i32
    %c0_i32_1 = arith.constant 0 : i32
    return %c0_i32, %c0_i32_0 : i32, i32
  }
  func.func @transform_2(%arg0: i32) -> (i32, i32) {
    %c0_i32 = arith.constant 0 : i32
    %c0_i32_0 = arith.constant 0 : i32
    %c0_i32_1 = arith.constant 0 : i32
    return %c0_i32, %c0_i32_0 : i32, i32
  }
  func.func @transform_3(%arg0: i32) -> (i32, i32) {
    %c0_i32 = arith.constant 0 : i32
    %c0_i32_0 = arith.constant 0 : i32
    %c0_i32_1 = arith.constant 0 : i32
    return %c0_i32, %c0_i32_0 : i32, i32
  }
  func.func @transform_4(%arg0: i32) -> (i32, i32) {
    %c0_i32 = arith.constant 0 : i32
    %c0_i32_0 = arith.constant 0 : i32
    %c0_i32_1 = arith.constant 0 : i32
    return %c0_i32, %c0_i32_0 : i32, i32
  }
  func.func @transform_5(%arg0: i32) -> (i32, i32) {
    %c0_i32 = arith.constant 0 : i32
    %c0_i32_0 = arith.constant 0 : i32
    %c0_i32_1 = arith.constant 0 : i32
    return %c0_i32, %c0_i32_0 : i32, i32
  }
  func.func @transform_6(%arg0: i32) -> (i32, i32) {
    %c0_i32 = arith.constant 0 : i32
    %c0_i32_0 = arith.constant 0 : i32
    %c0_i32_1 = arith.constant 0 : i32
    return %c0_i32, %c0_i32_0 : i32, i32
  }
  func.func @transform_7(%arg0: i32) -> (i32, i32) {
    %c0_i32 = arith.constant 0 : i32
    %c0_i32_0 = arith.constant 0 : i32
    %c0_i32_1 = arith.constant 0 : i32
    return %c0_i32, %c0_i32_0 : i32, i32
  }
  func.func @transform_8(%arg0: i32) -> (i32, i32) {
    %c0_i32 = arith.constant 0 : i32
    %c0_i32_0 = arith.constant 0 : i32
    %c0_i32_1 = arith.constant 0 : i32
    return %c0_i32, %c0_i32_0 : i32, i32
  }
  func.func @transform_9(%arg0: i32) -> (i32, i32) {
    %c0_i32 = arith.constant 0 : i32
    %c0_i32_0 = arith.constant 0 : i32
    %c0_i32_1 = arith.constant 0 : i32
    return %c0_i32, %c0_i32_0 : i32, i32
  }
  func.func @transform_10(%arg0: i32) -> (i32, i32, i32) {
    %c0_i32 = arith.constant 0 : i32
    %c0_i32_0 = arith.constant 0 : i32
    %c0_i32_1 = arith.constant 0 : i32
    return %arg0, %c0_i32, %c0_i32_0 : i32, i32, i32
  }
}

</mosaic_0001>

<bundles_post_ra>
// kernel: tpu_custom_call.1
= control target key start
LH: loop header
LB: loop body
LE: loop exit
PB: predicated region body
PF: predicated region fallthrough
CT: control target
= control target key end

     0   :  { %s794_s13 = smov 0   ;;  %s881_s0 = inlined_call_operand.vmem [shape: f32[2,8,56], index: 0, kind: input, shape index: {}]   ;;  %s882_s1 = inlined_call_operand.vmem [shape: bf16[56,32], index: 1, kind: input, shape index: {}]   ;;  %s883_s2 = inlined_call_operand.vmem [shape: f32[1,32], index: 2, kind: input, shape index: {}]   ;;  %s884_s3 = inlined_call_operand.vmem [shape: f32[1,32], index: 3, kind: input, shape index: {}]   ;;  %s885_s4 = inlined_call_operand.vmem [shape: bf16[56,64], index: 4, kind: input, shape index: {}]   ;;  %s886_s5 = inlined_call_operand.vmem [shape: f32[1,64], index: 5, kind: input, shape index: {}]   ;;  %s887_s6 = inlined_call_operand.vmem [shape: bf16[64,32], index: 6, kind: input, shape index: {}]   ;;  %s888_s7 = inlined_call_operand.vmem [shape: f32[1,32], index: 7, kind: input, shape index: {}]   ;;  %s889_s8 = inlined_call_operand.vmem [shape: bf16[32,2], index: 8, kind: input, shape index: {}]   ;;  %s890_s9 = inlined_call_operand.vmem [shape: f32[1,2], index: 9, kind: input, shape index: {}]   ;;  %s891_s10 = inlined_call_operand.vmem [shape: f32[2,8,2], index: 10, kind: output, shape index: {}]  }
   0x1 LB: > { %s639_s14 = sadd.s32 4294967295, %s737_s13   ;;  %p643_p0 = scmp.ge.s32.totalorder %s737_s13, 1  ;;  %s737_s13 = sphi %s794_s13, %s20_s13  }
   0x2   : > { %p311_p1 = scmp.lt.s32.totalorder %s737_s13, 3 }
   0x4   : > { %p312_p2 = pnand %p643_p0, %p311_p1 }
   0x5   : > { %p347_p3 = scmp.lt.s32.totalorder (!%p312_p2), %s639_s14, 1 }
   0x6   : > { %315 = sbr.rel (%p312_p2) target bundleno = 744 (0x2e8), region = 60 }
   0xb   : > { %v364_v0 = vld [vmem:[%s882_s1 + $0x18] sm:$0xf]  ;;  %vm394_vm0 = vcmask 1043456   ;;  %s893_s14 = smov (!%p347_p3, %s639_s14), 1  ;;  %v702_v4 = vld [vmem:[%s882_s1 + $0x10] sm:$0xff]  ;;  %v701_v5 = vld [vmem:[%s882_s1 + $0x8] sm:$0xff] }
   0xc   : > { %v382_v1 = vunpack.c.l.b16 %v364_v0  ;;  %s644_s19 = sshll.u32 %s893_s14, 3  ;;  %v700_v6 = vld [vmem:[%s882_s1] sm:$0xff]  ;;  %vm390_vm1 = vcmask 457728   ;;  %vm417_vm2 = vcmask 261120   ;;  %v446_v17 = vld [vmem:[%s885_s4 + $0x18] sm:$0xf] }
   0xd   : > { %s350_s24 = scalar_lea.vmem %s881_s0, %s644_s19  ;;  %v720_v9 = vld [vmem:[%s883_s2] ss:$0 sm:$0xff]  ;;  %v464_v18 = vunpack.c.l.b16 %v446_v17  ;;  %v705_v21 = vld [vmem:[%s885_s4 + $0x10] sm:$0xff]  ;;  %v704_v24 = vld [vmem:[%s885_s4 + $0x8] sm:$0xff]  ;;  %vm529_vm3 = vcmask 523264   ;;  %s354_s25 = scalar_lea.vmem %s891_s10, %s644_s19  ;;  %vm584_vm4 = vcmask 15360  }
   0xe   : > { %v386_v2 = vpack.c.b16 %v382_v1, %v382_v1  ;;  %v356_v7 = vld [vmem:[%s350_s24] sm:$0xff]  ;;  %v709_v33 = vld [vmem:[%s887_s6 + $0x18] sm:$0xff]  ;;  %v708_v34 = vld [vmem:[%s887_s6 + $0x10] sm:$0xff] }
   0xf   : > { %v357_v8 = vpack.c.bf16 %v356_v7, %v356_v7  ;;  %v721_v12 = vld [vmem:[%s884_s3] ss:$0 sm:$0xff]  ;;  %v468_v19 = vpack.c.b16 %v464_v18, %v464_v18  ;;  %537 = vmatpush.bf16.msra.mxu2 %v709_v33  ;;  %v707_v46 = vld [vmem:[%s887_s6 + $0x8] sm:$0xff] }
  0x10   : > { %v396_v3 = vsel %vm394_vm0, %v386_v2, 0  ;;  %v703_v27 = vld [vmem:[%s885_s4] sm:$0xff]  ;;  %v711_v54 = vld [vmem:[%s889_s8 + $0x8] sm:$0xff] }
  0x11   : > { %402 = vmatpush.bf16.msra.mxu0 %v396_v3  ;;  %v476_v20 = vsel %vm394_vm0, %v468_v19, 0  ;;  %v706_v47 = vld [vmem:[%s887_s6] sm:$0xff]  ;;  %577 = vmatpush.bf16.msra.mxu3 %v711_v54 }
  0x12   : > { %482 = vmatpush.bf16.msra.mxu1 %v476_v20  ;;  %v722_v48 = vld [vmem:[%s886_s5] ss:$0 sm:$0xff] }
  0x13   : > { %538 = vmatpush.bf16.msra.mxu2 %v708_v34  ;;  %v710_v55 = vld [vmem:[%s889_s8] sm:$0xff] }
  0x14   : > { %v723_v56 = vld [vmem:[%s888_s7] ss:$0 sm:$0xff] }
  0x15   : > { %403 = vmatpush.bf16.msra.mxu0 %v702_v4  ;;  %578 = vmatpush.bf16.msra.mxu3 %v710_v55  ;;  %v724_v62 = vld [vmem:[%s890_s9] ss:$0 sm:$0xff] }
  0x16   : > { %483 = vmatpush.bf16.msra.mxu1 %v705_v21 }
  0x17   : > { %539 = vmatpush.bf16.msra.mxu2 %v707_v46 }
  0x19   : > { %404 = vmatpush.bf16.msra.mxu0 %v701_v5 }
  0x1a   : > { %484 = vmatpush.bf16.msra.mxu1 %v704_v24 }
  0x1b   : > { %540 = vmatpush.bf16.msra.mxu2 %v706_v47 }
  0x1d   : > { %405 = vmatpush.bf16.msra.mxu0 %v700_v6 }
  0x1e   : > { %485 = vmatpush.bf16.msra.mxu1 %v703_v27 }
  0x20   : > { %658 = vmatmul.msk.bf16.vlgmr.msra.gmra.mxu0 %vm390_vm1, %v357_v8 }
  0x9d   : > { %v407_v10 = vpop.f32.mrf.mxu0 }
  0x9e   : > { %v408_v11 = vadd.f32 %v720_v9, %v407_v10 }
  0xa0   : > { %725 = vtanh.f32 %v408_v11 }
  0xa5   : > { %v409_v13 = vpop.f32.mrf.mxu0 }
  0xa6   : > { %v726_v14 = vpop.eup %725 }
  0xa7   : > { %v416_v15 = vmul.f32 %v726_v14, %v721_v12 }
  0xa9   : > { %v418_v16 = vsel %vm417_vm2, %v416_v15, 0.0 }
  0xaa   : > { %419 = vadd.xlane.f32.xlu0 %v418_v16 }
 0x11d   : > { %v420_v22 = vpop.xlane.xlu0 %419 }
 0x11e   : > { %v421_v23 = vrot.slane %v420_v22, 4 }
 0x120   : > { %v422_v25 = vmax.f32 %v420_v22, %v421_v23 }
 0x122   : > { %v423_v26 = vrot.slane %v422_v25, 2 }
 0x124   : > { %v424_v28 = vmax.f32 %v422_v25, %v423_v26 }
 0x126   : > { %v425_v29 = vrot.slane %v424_v28, 1 }
 0x128   : > { %v426_v30 = vmax.f32 %v424_v28, %v425_v29 }
 0x12a   : > { %v427_v31 = vsub.f32 %v420_v22, %v426_v30 }
 0x12c   : > { %v428_v32 = vmul.f32 1.442695, %v427_v31 }
 0x12e   : > { %727 = vpow2.f32 %v428_v32 }
 0x134   : > { %v728_v35 = vpop.eup %727 }
 0x135   : > { %v430_v36 = vrot.slane %v728_v35, 4 }
 0x137   : > { %v431_v37 = vadd.f32 %v728_v35, %v430_v36 }
 0x139   : > { %v432_v38 = vrot.slane %v431_v37, 2 }
 0x13b   : > { %v433_v39 = vadd.f32 %v432_v38, %v431_v37 }
 0x13d   : > { %v434_v40 = vrot.slane %v433_v39, 1 }
 0x13f   : > { %v435_v41 = vadd.f32 %v434_v40, %v433_v39 }
 0x141   : > { %729 = vrcp.f32 %v435_v41 }
 0x147   : > { %v730_v42 = vpop.eup %729 }
 0x148   : > { %v437_v43 = vmul.f32 %v730_v42, %v728_v35 }
 0x14a   : > { %v438_v44 = vmul.f32 %v437_v43, %v356_v7 }
 0x14c   : > { %v439_v45 = vpack.c.bf16 %v438_v44, %v438_v44 }
 0x14e   : > { %671 = vmatmul.msk.bf16.vlgmr.msra.gmra.mxu1 %vm390_vm1, %v439_v45 }
 0x1cb   : > { %v487_v49 = vpop.f32.mrf.mxu1 }
 0x1cc   : > { %v488_v50 = vadd.f32 %v722_v48, %v487_v49 }
 0x1ce   : > { %v491_v51 = vmax.f32 %v488_v50, 0.0 }
 0x1d0   : > { %v492_v52 = vpack.c.bf16 %v491_v51, %v491_v51 }
 0x1d2   : > { %688 = vmatmul.msk.bf16.vlgmr.msra.gmra.mxu2 %vm529_vm3, %v492_v52 }
 0x1d3   : > { %v489_v53 = vpop.f32.mrf.mxu1 }
 0x255   : > { %v542_v57 = vpop.f32.mrf.mxu2 }
 0x256   : > { %v543_v58 = vadd.f32 %v723_v56, %v542_v57 }
 0x258   : > { %v546_v59 = vmax.f32 %v543_v58, 0.0 }
 0x25a   : > { %v547_v60 = vpack.c.bf16 %v546_v59, %v546_v59 }
 0x25c   : > { %697 = vmatmul.msk.bf16.vlgmr.msra.gmra.mxu3 %vm417_vm2, %v547_v60 }
 0x25d   : > { %v544_v61 = vpop.f32.mrf.mxu2 }
 0x2df   : > { %v580_v63 = vpop.f32.mrf.mxu3 }
 0x2e0   : > { %v581_v0 = vadd.f32 %v724_v62, %v580_v63 }
 0x2e2   : > { %585 = vst.msk [vmem:[%s354_s25] sm:$0xff] %vm584_vm4, %v581_v0 }
 0x2e7   : > { %v582_v1 = vpop.f32.mrf.mxu3 }
 0x2e8 PF: > { %s20_s13 = sadd.s32 1, %s737_s13  }
 0x2e9   : > { %p17_p4 = scmp.ge.s32.totalorder %s20_s13, 4  }
 0x2eb   :  { %19 = sbr.rel (!%p17_p4) target bundleno = 1 (0x1), region = 90 }

</bundles_post_ra>
